<compile_context>
chip_gen: v7x
topology: tpu7x:2x2x1
jax: 0.10.0
libtpu: 0.0.40
codegen_flags: <defaults>
</compile_context>

<pallas_src>
import math

import jax
import jax.numpy as jnp
from jax import lax
from jax.experimental import pallas as pl
from jax.experimental.pallas import tpu as pltpu


# ---------------------------------------------------------------------------
# One-time parameter preparation (outside the hot path)
# ---------------------------------------------------------------------------
def prepare_params(W, U, bias, *, param_dtype=jnp.float32):
    """Permute gate columns from PyTorch's [i | f | g | o] to [i | f | o | g].

    The permutation lets the kernels apply one sigmoid over a contiguous
    (B, 3H) slab and one tanh over the trailing (B, H) slab.  `param_dtype`
    controls MXU operand storage (bf16 halves resident-weight VMEM and uses
    the bf16-native MXU path); accumulation is always f32, bias is kept f32
    because it is added after accumulation.
    """
    H = U.shape[0]
    perm = jnp.concatenate([
        jnp.arange(0, 2 * H),        # i, f
        jnp.arange(3 * H, 4 * H),    # o
        jnp.arange(2 * H, 3 * H),    # g
    ])
    Wp = W[:, perm].astype(param_dtype)                       # (I, 4H)
    Up = U[:, perm].astype(param_dtype)                       # (H, 4H)
    b2d = bias[perm].reshape(1, 4 * H).astype(jnp.float32)    # (1, 4H), 2D lane layout
    return Wp, Up, b2d


# ---------------------------------------------------------------------------
# Single-step kernel (the module's forward)
# ---------------------------------------------------------------------------
def lstm_cell_kernel(x_ref, h_ref, c_ref, w_ref, u_ref, b_ref,
                     h_out_ref, c_out_ref):
    H = c_ref.shape[-1]
    mxu_dtype = w_ref.dtype

    # Two MXU dots (x@W, h@U) accumulated into one f32 gates value.
    gates = jnp.dot(x_ref[...].astype(mxu_dtype), w_ref[...],
                    preferred_element_type=jnp.float32)
    gates = gates + jnp.dot(h_ref[...].astype(mxu_dtype), u_ref[...],
                            preferred_element_type=jnp.float32)
    gates = gates + b_ref[...]

    # Columns are [i | f | o | g]: one sigmoid over (B, 3H), one tanh over (B, H).
    sig = jax.nn.sigmoid(gates[:, :3 * H])
    i_t = sig[:, 0 * H:1 * H]
    f_t = sig[:, 1 * H:2 * H]
    o_t = sig[:, 2 * H:3 * H]
    g_t = jnp.tanh(gates[:, 3 * H:4 * H])

    c_new = f_t * c_ref[...] + i_t * g_t
    h_new = o_t * jnp.tanh(c_new)

    h_out_ref[...] = h_new.astype(h_out_ref.dtype)
    c_out_ref[...] = c_new.astype(c_out_ref.dtype)


def lstm_cell_pallas(x, h_t, c_t, Wp, Up, b2d):
    """One CustomLSTMCell forward step. Returns (h_t, c_t)."""
    # Mirror PyTorch's x.squeeze() but never squeeze the batch dim.
    x = x.reshape(x.shape[0], x.shape[-1])
    B, I = x.shape
    H = h_t.shape[-1]

    vmem = pl.BlockSpec(memory_space=pltpu.MemorySpace.VMEM)
    cost = pl.CostEstimate(
        flops=2 * B * (I + H) * 4 * H,
        transcendentals=5 * B * H,
        bytes_accessed=int(x.size * x.dtype.itemsize
                           + (h_t.size + c_t.size) * 4
                           + (Wp.size + Up.size) * Wp.dtype.itemsize
                           + b2d.size * 4 + 2 * B * H * 4),
    )

    h_new, c_new = pl.pallas_call(
        lstm_cell_kernel,
        out_shape=(
            jax.ShapeDtypeStruct((B, H), h_t.dtype),
            jax.ShapeDtypeStruct((B, H), c_t.dtype),
        ),
        in_specs=[vmem] * 6,
        out_specs=(vmem, vmem),
        input_output_aliases={2: 1},   # reuse c_t buffer for c_out (if donated)
        cost_estimate=cost,
    )(x, h_t, c_t, Wp, Up, b2d)
    return h_new, c_new


# ---------------------------------------------------------------------------
# Phase 1: hoisted input projection  gates_x = x_seq @ W + b
# ---------------------------------------------------------------------------
def _xproj_kernel(x_ref, w_ref, b_ref, gx_ref):
    gx_ref[...] = (jnp.dot(x_ref[...].astype(w_ref.dtype), w_ref[...],
                           preferred_element_type=jnp.float32)
                   + b_ref[...]).astype(gx_ref.dtype)


def _input_projection(x_seq, Wp, b2d, *, row_tile=256):
    """One lane-dense (T*B, I) @ (I, 4H) matmul with bias folded in.

    Separate pallas_call with "parallel" grid semantics so the two v7x
    TensorCores can split it; only the serial h@U recurrence stays in the
    time-grid kernel.
    """
    T, B, I = x_seq.shape
    G = Wp.shape[-1]                         # 4H
    TB = T * B
    x_flat = x_seq.reshape(TB, I)
    tm = TB if TB <= row_tile else row_tile

    gx = pl.pallas_call(
        _xproj_kernel,
        out_shape=jax.ShapeDtypeStruct((TB, G), jnp.float32),
        grid=(pl.cdiv(TB, tm),),
        in_specs=[
            pl.BlockSpec((tm, I), lambda m: (m, 0)),
            pl.BlockSpec((I, G), lambda m: (0, 0)),
            pl.BlockSpec((1, G), lambda m: (0, 0)),
        ],
        out_specs=pl.BlockSpec((tm, G), lambda m: (m, 0)),
        compiler_params=pltpu.CompilerParams(
            dimension_semantics=("parallel",)),
        cost_estimate=pl.CostEstimate(
            flops=2 * TB * I * G,
            transcendentals=0,
            bytes_accessed=int(x_flat.size * x_flat.dtype.itemsize
                               + Wp.size * Wp.dtype.itemsize
                               + b2d.size * 4 + TB * G * 4)),
    )(x_flat, Wp, b2d)
    return gx.reshape(T, B, G)


# ---------------------------------------------------------------------------
# Phase 2: serial recurrence (only h @ U inside the time loop)
# ---------------------------------------------------------------------------
def lstm_seq_kernel(gx_ref, h0_ref, c0_ref, u_ref,
                    hseq_ref, cT_ref, h_scr, c_scr):
    H = h_scr.shape[-1]
    t_blk = gx_ref.shape[0]
    mxu_dtype = u_ref.dtype

    @pl.when(pl.program_id(0) == 0)
    def _():
        h_scr[...] = h0_ref[...].astype(jnp.float32)
        c_scr[...] = c0_ref[...].astype(jnp.float32)

    def step(t, carry):
        # Recurrent projection only: (B, H) @ (H, 4H); gates_x already holds
        # x@W + bias, so no per-step bias broadcast/add.
        gates = gx_ref[t] + jnp.dot(h_scr[...].astype(mxu_dtype), u_ref[...],
                                    preferred_element_type=jnp.float32)

        sig = jax.nn.sigmoid(gates[:, :3 * H])
        i_t = sig[:, 0 * H:1 * H]
        f_t = sig[:, 1 * H:2 * H]
        o_t = sig[:, 2 * H:3 * H]
        g_t = jnp.tanh(gates[:, 3 * H:4 * H])

        c_new = f_t * c_scr[...] + i_t * g_t
        h_new = o_t * jnp.tanh(c_new)

        h_scr[...] = h_new
        c_scr[...] = c_new
        hseq_ref[t] = h_new.astype(hseq_ref.dtype)
        return carry

    # Several timesteps per grid iteration; unrolled for LLO scheduler visibility.
    lax.fori_loop(0, t_blk, step, 0, unroll=True)

    # Final cell state: write only once, on the last grid step (frees the
    # per-step vst slot).
    @pl.when(pl.program_id(0) == pl.num_programs(0) - 1)
    def _():
        cT_ref[...] = c_scr[...].astype(cT_ref.dtype)


def _choose_time_block(T, max_block=8):
    tb = 1
    for cand in range(1, min(T, max_block) + 1):
        if T % cand == 0:
            tb = cand
    return tb


def lstm_sequence_pallas(x_seq, h0, c0, Wp, Up, b2d, *, max_time_block=8):
    """Runs the cell over a whole (T, B, I) sequence. Returns (h_seq, c_T)."""
    T, B, I = x_seq.shape
    H = h0.shape[-1]
    G = 4 * H

    # Phase 1: hoisted, parallel input projection (bias folded in).
    gates_x = _input_projection(x_seq, Wp, b2d)          # (T, B, 4H), f32

    # Phase 2: serial recurrence, t_blk steps per grid iteration.
    t_blk = _choose_time_block(T, max_time_block)

    cost = pl.CostEstimate(
        flops=2 * T * B * H * G,
        transcendentals=5 * B * H * T,
        bytes_accessed=int(gates_x.size * 4
                           + Up.size * Up.dtype.itemsize
                           + 2 * B * H * 4
                           + T * B * H * 4 + B * H * 4),
    )

    h_seq, c_T = pl.pallas_call(
        lstm_seq_kernel,
        out_shape=(
            jax.ShapeDtypeStruct((T, B, H), h0.dtype),
            jax.ShapeDtypeStruct((B, H), c0.dtype),
        ),
        grid=(T // t_blk,),
        in_specs=[
            pl.BlockSpec((t_blk, B, G), lambda t: (t, 0, 0)),   # gates_x streamed
            pl.BlockSpec((B, H), lambda t: (0, 0)),             # h0 resident
            pl.BlockSpec((B, H), lambda t: (0, 0)),             # c0 resident
            pl.BlockSpec((H, G), lambda t: (0, 0)),             # U resident
        ],
        out_specs=(
            pl.BlockSpec((t_blk, B, H), lambda t: (t, 0, 0)),   # h per chunk
            pl.BlockSpec((B, H), lambda t: (0, 0)),             # final c
        ),
        scratch_shapes=[
            pltpu.VMEM((B, H), jnp.float32),                    # h carry
            pltpu.VMEM((B, H), jnp.float32),                    # c carry
        ],
        compiler_params=pltpu.CompilerParams(
            dimension_semantics=("arbitrary",),
            vmem_limit_bytes=32 * 1024 * 1024),
        cost_estimate=cost,
    )(gates_x, h0, c0, Up)
    return h_seq, c_T


# ---------------------------------------------------------------------------
# Pure-JAX references (match the PyTorch forward)
# ---------------------------------------------------------------------------
def lstm_cell_ref(x, h_t, c_t, W, U, bias):
    x = x.reshape(x.shape[0], x.shape[-1])
    H = h_t.shape[-1]
    gates = x @ W + h_t @ U + bias
    i_t = jax.nn.sigmoid(gates[:, :H])
    f_t = jax.nn.sigmoid(gates[:, H:2 * H])
    g_t = jnp.tanh(gates[:, 2 * H:3 * H])
    o_t = jax.nn.sigmoid(gates[:, 3 * H:])
    c_new = f_t * c_t + i_t * g_t
    h_new = o_t * jnp.tanh(c_new)
    return h_new, c_new


def lstm_seq_ref(x_seq, h0, c0, W, U, bias):
    def step(carry, x_t):
        h, c = lstm_cell_ref(x_t, carry[0], carry[1], W, U, bias)
        return (h, c), h
    (_, cT), h_seq = jax.lax.scan(step, (h0, c0), x_seq)
    return h_seq, cT


if __name__ == "__main__":
    batch = 8
    input_size = 32
    hidden_size = 128
    seq_len = 16

    key = jax.random.PRNGKey(0)
    k_x, k_h, k_c, k_w, k_u, k_b, k_seq = jax.random.split(key, 7)

    # Deterministic init matching uniform(-stdv, stdv), stdv = 1/sqrt(H)
    stdv = 1.0 / math.sqrt(hidden_size)
    W = jax.random.uniform(k_w, (input_size, hidden_size * 4),
                           jnp.float32, -stdv, stdv)
    U = jax.random.uniform(k_u, (hidden_size, hidden_size * 4),
                           jnp.float32, -stdv, stdv)
    bias = jax.random.uniform(k_b, (hidden_size * 4,), jnp.float32, -stdv, stdv)

    # x carries a singleton dim that forward() squeezes away.
    x = jax.random.normal(k_x, (batch, 1, input_size), jnp.float32)
    h0 = jax.random.normal(k_h, (batch, hidden_size), jnp.float32)
    c0 = jax.random.normal(k_c, (batch, hidden_size), jnp.float32)
    x_seq = jax.random.normal(k_seq, (seq_len, batch, input_size), jnp.float32)

    # ---------------- f32 parameters (bit-faithful validation path) --------
    Wp, Up, b2d = prepare_params(W, U, bias, param_dtype=jnp.float32)

    # Single step (the module's forward).
    h_out, c_out = jax.jit(lstm_cell_pallas)(x, h0, c0, Wp, Up, b2d)
    jax.block_until_ready((h_out, c_out))
    h_ref, c_ref = lstm_cell_ref(x, h0, c0, W, U, bias)
    assert jnp.allclose(h_out, h_ref, atol=1e-5, rtol=1e-5)
    assert jnp.allclose(c_out, c_ref, atol=1e-5, rtol=1e-5)

    # Time-fused sequence (hoisted x@W projection + serial h@U recurrence).
    h_seq, c_T = jax.jit(lstm_sequence_pallas)(x_seq, h0, c0, Wp, Up, b2d)
    jax.block_until_ready((h_seq, c_T))
    h_seq_ref, c_T_ref = lstm_seq_ref(x_seq, h0, c0, W, U, bias)
    assert jnp.allclose(h_seq, h_seq_ref, atol=1e-4, rtol=1e-4)
    assert jnp.allclose(c_T, c_T_ref, atol=1e-4, rtol=1e-4)

    # ---------------- bf16 MXU-operand path (f32 accumulation) -------------
    Wb, Ub, b2db = prepare_params(W, U, bias, param_dtype=jnp.bfloat16)
    h_seq_b, c_T_b = jax.jit(lstm_sequence_pallas)(x_seq, h0, c0, Wb, Ub, b2db)
    jax.block_until_ready((h_seq_b, c_T_b))
    assert float(jnp.max(jnp.abs(h_seq_b - h_seq_ref))) < 5e-2
    assert float(jnp.max(jnp.abs(c_T_b - c_T_ref))) < 5e-2

    print("KERNEL_OK")
</pallas_src>

<mosaic_0001>
module attributes {stable_mosaic.version = 11 : i64} {
  func.func @lstm_cell_kernel(%arg0: memref<8x32xf32, #tpu.memory_space<vmem>>, %arg1: memref<8x128xf32, #tpu.memory_space<vmem>>, %arg2: memref<8x128xf32, #tpu.memory_space<vmem>>, %arg3: memref<32x512xf32, #tpu.memory_space<vmem>>, %arg4: memref<128x512xf32, #tpu.memory_space<vmem>>, %arg5: memref<1x512xf32, #tpu.memory_space<vmem>>, %arg6: memref<8x128xf32, #tpu.memory_space<vmem>>, %arg7: memref<8x128xf32, #tpu.memory_space<vmem>>) attributes {dimension_semantics = [], scalar_prefetch = 0 : i64, scratch_operands = 0 : i64, tpu.core_type = #tpu.core_type<tc>} {
    %c0 = arith.constant 0 : index
    %c0_0 = arith.constant 0 : index
    %0 = vector.load %arg0[%c0, %c0_0] : memref<8x32xf32, #tpu.memory_space<vmem>>, vector<8x32xf32>
    %c0_1 = arith.constant 0 : index
    %c0_2 = arith.constant 0 : index
    %1 = vector.load %arg3[%c0_1, %c0_2] : memref<32x512xf32, #tpu.memory_space<vmem>>, vector<32x512xf32>
    %cst = arith.constant dense<0.000000e+00> : vector<8x512xf32>
    %2 = tpu.matmul %0, %1, %cst {dimension_numbers = #tpu.dot_dimension_numbers<[1], [0], [0], [1], [0, 0, 1, 1], [], []>} : vector<8x32xf32>, vector<32x512xf32>, vector<8x512xf32> -> vector<8x512xf32>
    %c0_3 = arith.constant 0 : index
    %c0_4 = arith.constant 0 : index
    %3 = vector.load %arg1[%c0_3, %c0_4] : memref<8x128xf32, #tpu.memory_space<vmem>>, vector<8x128xf32>
    %c0_5 = arith.constant 0 : index
    %c0_6 = arith.constant 0 : index
    %4 = vector.load %arg4[%c0_5, %c0_6] : memref<128x512xf32, #tpu.memory_space<vmem>>, vector<128x512xf32>
    %cst_7 = arith.constant dense<0.000000e+00> : vector<8x512xf32>
    %5 = tpu.matmul %3, %4, %cst_7 {dimension_numbers = #tpu.dot_dimension_numbers<[1], [0], [0], [1], [0, 0, 1, 1], [], []>} : vector<8x128xf32>, vector<128x512xf32>, vector<8x512xf32> -> vector<8x512xf32>
    %6 = arith.addf %2, %5 : vector<8x512xf32>
    %c0_8 = arith.constant 0 : index
    %c0_9 = arith.constant 0 : index
    %7 = vector.load %arg5[%c0_8, %c0_9] : memref<1x512xf32, #tpu.memory_space<vmem>>, vector<1x512xf32>
    %8 = vector.broadcast %7 : vector<1x512xf32> to vector<8x512xf32>
    %9 = arith.addf %6, %8 : vector<8x512xf32>
    %10 = vector.extract_strided_slice %9 {offsets = [0, 0], sizes = [8, 384], strides = [1, 1]} : vector<8x512xf32> to vector<8x384xf32>
    %11 = arith.negf %10 : vector<8x384xf32>
    %12 = math.exp %11 : vector<8x384xf32>
    %cst_10 = arith.constant 1.000000e+00 : f32
    %13 = vector.broadcast %cst_10 : f32 to vector<8x384xf32>
    %14 = arith.addf %13, %12 : vector<8x384xf32>
    %15 = arith.divf %13, %14 : vector<8x384xf32>
    %16 = vector.extract_strided_slice %15 {offsets = [0, 0], sizes = [8, 128], strides = [1, 1]} : vector<8x384xf32> to vector<8x128xf32>
    %17 = vector.extract_strided_slice %15 {offsets = [0, 128], sizes = [8, 128], strides = [1, 1]} : vector<8x384xf32> to vector<8x128xf32>
    %18 = vector.extract_strided_slice %15 {offsets = [0, 256], sizes = [8, 128], strides = [1, 1]} : vector<8x384xf32> to vector<8x128xf32>
    %19 = vector.extract_strided_slice %9 {offsets = [0, 384], sizes = [8, 128], strides = [1, 1]} : vector<8x512xf32> to vector<8x128xf32>
    %20 = math.tanh %19 : vector<8x128xf32>
    %c0_11 = arith.constant 0 : index
    %c0_12 = arith.constant 0 : index
    %21 = vector.load %arg2[%c0_11, %c0_12] : memref<8x128xf32, #tpu.memory_space<vmem>>, vector<8x128xf32>
    %22 = arith.mulf %17, %21 : vector<8x128xf32>
    %23 = arith.mulf %16, %20 : vector<8x128xf32>
    %24 = arith.addf %22, %23 : vector<8x128xf32>
    %25 = math.tanh %24 : vector<8x128xf32>
    %26 = arith.mulf %18, %25 : vector<8x128xf32>
    %c0_13 = arith.constant 0 : index
    %c0_14 = arith.constant 0 : index
    %27 = vector.load %arg6[%c0_13, %c0_14] : memref<8x128xf32, #tpu.memory_space<vmem>>, vector<8x128xf32>
    tpu.vector_store %arg6[%c0_13, %c0_14], %26 {strides = array<i32>} : memref<8x128xf32, #tpu.memory_space<vmem>>, vector<8x128xf32>,
    %c0_15 = arith.constant 0 : index
    %c0_16 = arith.constant 0 : index
    %28 = vector.load %arg7[%c0_15, %c0_16] : memref<8x128xf32, #tpu.memory_space<vmem>>, vector<8x128xf32>
    tpu.vector_store %arg7[%c0_15, %c0_16], %24 {strides = array<i32>} : memref<8x128xf32, #tpu.memory_space<vmem>>, vector<8x128xf32>,
    return
  }
}

</mosaic_0001>

<bundles_post_ra>
// kernel: lstm_cell_pallas.1
= control target key start
LH: loop header
LB: loop body
LE: loop exit
PB: predicated region body
PF: predicated region fallthrough
CT: control target
= control target key end

     0   :  { %13 = vsyncpa [#allocation3], 0  ;;  %s925_s0 = inlined_call_operand.vmem [shape: f32[8,32], index: 0, kind: input, shape index: {}]   ;;  %s926_s1 = inlined_call_operand.vmem [shape: f32[8,128], index: 1, kind: input, shape index: {}]   ;;  %s927_s2 = inlined_call_operand.hbm [shape: f32[8,128], index: 2, kind: input, shape index: {}, may-alias: {2,7}]   ;;  %s928_s3 = inlined_call_operand.hbm [shape: f32[32,512], index: 3, kind: input, shape index: {}]   ;;  %s929_s4 = inlined_call_operand.hbm [shape: f32[128,512], index: 4, kind: input, shape index: {}]   ;;  %s930_s5 = inlined_call_operand.hbm [shape: f32[1,512], index: 5, kind: input, shape index: {}]   ;;  %s931_s6 = inlined_call_operand.hbm [shape: f32[8,128], index: 6, kind: output, shape index: {0}]   ;;  %s932_s7 = inlined_call_operand.hbm [shape: f32[8,128], index: 7, kind: output, shape index: {1}, may-alias: {2,7}]  }
   0x1   :  { %14 = vsyncpa [#allocation6], 0 }
   0x2   :  { %15 = vsyncpa [#allocation9], 0 }
   0x3   :  { %16 = vsyncpa [#allocation4], 0 }
   0x4   :  { %17 = vsyncpa [#allocation12], 0  ;;  %s788_s24 = smov [#allocation5]   ;;  %s646_s28 = scalar_lea.hbm %s928_s3, 2048 }
   0x5   :  { %s37_s25 = sshll.u32 %s788_s24, 4  ;;  %p647_p0 = scmp.ne.s32.totalorder %s928_s3, %s646_s28  ;;  %s38_s25 = int_to_ptr.vmem [resolvable:$true] %s37_s25 }
   0x6   :  { %p650_p1 = scmp.lt.u32.totalorder %s646_s28, %s928_s3 }
   0x8   :  { %p652_p2 = pnand %p650_p1, %p647_p0 }
   0xa   :  { %655 = shalt.err (!%p652_p2)
}
   0xb   :  { %s656_s10 = scalar_lea.vmem %s38_s25, 2048  ;;  %p661_p4 = scmp.lt.s32.totalorder %s38_s25, %s38_s25 }
   0xc   :  { %p657_p3 = scmp.ne.s32.totalorder %s38_s25, %s656_s10  ;;  %p662_p5 = scmp.lt.s32.totalorder %s656_s10, %s656_s10 }
   0xe   :  { %p663_p6 = por %p662_p5, %p661_p4 }
  0x10   :  { %p664_p7 = pnand %p663_p6, %p657_p3 }
  0x12   :  { %667 = shalt.err (!%p664_p7)
}
  0x13   :  { %s789_s11 = smov 512   ;;  %s790_s12 = smov 32  }
  0x14   :  { %43 = dma.hbm_to_vmem [thread:$0]  %s928_s3, 2048, %s38_s25, [#allocation6], %s789_s11, %s789_s11, %s790_s12  }
  0x15   :  { %s791_s15 = smov [#allocation2]   ;;  %s792_s17 = smov [#allocation7]  }
  0x16   :  { %s28_s16 = sshll.u32 %s791_s15, 4  ;;  %s49_s18 = sshll.u32 %s792_s17, 4  ;;  %s29_s16 = int_to_ptr.vmem [resolvable:$true] %s28_s16  ;;  %s50_s18 = int_to_ptr.vmem [resolvable:$true] %s49_s18 }
  0x17   :  { %s668_s21 = scalar_lea.hbm %s927_s2, 128 }
  0x18   :  { %p669_p8 = scmp.ne.s32.totalorder %s927_s2, %s668_s21  ;;  %p672_p9 = scmp.lt.u32.totalorder %s668_s21, %s927_s2 }
  0x1a   :  { %p674_p10 = pnand %p672_p9, %p669_p8 }
  0x1c   :  { %677 = shalt.err (!%p674_p10)
}
  0x1d   :  { %s678_s3 = scalar_lea.vmem %s29_s16, 128  ;;  %p683_p12 = scmp.lt.s32.totalorder %s29_s16, %s29_s16 }
  0x1e   :  { %p679_p11 = scmp.ne.s32.totalorder %s29_s16, %s678_s3  ;;  %p684_p13 = scmp.lt.s32.totalorder %s678_s3, %s678_s3 }
  0x20   :  { %p685_p0 = por %p684_p13, %p683_p12 }
  0x22   :  { %p686_p1 = pnand %p685_p0, %p679_p11 }
  0x24   :  { %689 = shalt.err (!%p686_p1)
}
  0x25   :  { %31 = dma.hbm_to_vmem [thread:$0]  %s927_s2, 128, %s29_s16, [#allocation3]  }
  0x26   :  { %s690_s30 = scalar_lea.hbm %s929_s4, 8192 }
  0x27   :  { %p691_p2 = scmp.ne.s32.totalorder %s929_s4, %s690_s30  ;;  %p694_p3 = scmp.lt.u32.totalorder %s690_s30, %s929_s4 }
  0x29   :  { %p696_p4 = pnand %p694_p3, %p691_p2 }
  0x2b   :  { %699 = shalt.err (!%p696_p4)
}
  0x2c   :  { %s700_s14 = scalar_lea.vmem %s50_s18, 8192  ;;  %p705_p6 = scmp.lt.s32.totalorder %s50_s18, %s50_s18 }
  0x2d   :  { %p701_p5 = scmp.ne.s32.totalorder %s50_s18, %s700_s14  ;;  %p706_p7 = scmp.lt.s32.totalorder %s700_s14, %s700_s14 }
  0x2f   :  { %p707_p8 = por %p706_p7, %p705_p6 }
  0x31   :  { %p708_p9 = pnand %p707_p8, %p701_p5 }
  0x33   :  { %711 = shalt.err (!%p708_p9)
}
  0x34   :  { %55 = dma.hbm_to_vmem [thread:$0]  %s929_s4, 8192, %s50_s18, [#allocation6], %s789_s11, %s789_s11, %s790_s12  }
  0x35   :  { %s793_s16 = smov [#allocation8]   ;;  %s712_s21 = scalar_lea.hbm %s930_s5, 64 }
  0x36   :  { %s62_s17 = sshll.u32 %s793_s16, 4  ;;  %p713_p10 = scmp.ne.s32.totalorder %s930_s5, %s712_s21  ;;  %s63_s17 = int_to_ptr.vmem [resolvable:$true] %s62_s17 }
  0x37   :  { %p716_p11 = scmp.lt.u32.totalorder %s712_s21, %s930_s5 }
  0x39   :  { %p718_p12 = pnand %p716_p11, %p713_p10 }
  0x3b   :  { %721 = shalt.err (!%p718_p12)
}
  0x3c   :  { %s722_s3 = scalar_lea.vmem %s63_s17, 64  ;;  %p727_p0 = scmp.lt.s32.totalorder %s63_s17, %s63_s17 }
  0x3d   :  { %p723_p13 = scmp.ne.s32.totalorder %s63_s17, %s722_s3  ;;  %p728_p1 = scmp.lt.s32.totalorder %s722_s3, %s722_s3 }
  0x3f   :  { %p729_p2 = por %p728_p1, %p727_p0 }
  0x41   :  { %p730_p3 = pnand %p729_p2, %p723_p13 }
  0x43   :  { %733 = shalt.err (!%p730_p3)
}
  0x44   :  { %65 = dma.hbm_to_vmem [thread:$0]  %s930_s5, 64, %s63_s17, [#allocation9]  }
  0x45   :  { %778 = dma.done.wait [#allocation3], 128  }
  0x46   :  { %779 = vsyncadd [#allocation3], 4294967168 }
  0x47   :  { %780 = dma.done.wait [#allocation6], 10240  }
  0x48   :  { %781 = vsyncadd [#allocation6], 4294957056 }
  0x49   :  { %782 = dma.done.wait [#allocation9], 64  }
  0x4a   :  { %783 = vsyncadd [#allocation9], 4294967232  ;;  %v794_v0 = vmov 0.0   ;;  %v97_v1 = vld [vmem:[#allocation7 + $0x8] sm:$0xff]  ;;  %v96_v3 = vld [vmem:[#allocation7] sm:$0xff]  ;;  %vm302_vm0 = vcmask 261120  }
  0x4b   :  { %224 = vmatprep.mubr.f32.mxu0 %v794_v0  ;;  %295 = vmatprep.mubr.f32.mxu1 %v794_v0  ;;  %v101_v2 = vld [vmem:[#allocation7 + $0x28] sm:$0xff]  ;;  %v100_v5 = vld [vmem:[#allocation7 + $0x20] sm:$0xff]  ;;  %v99_v12 = vld [vmem:[#allocation7 + $0x18] sm:$0xff] }
  0x4c   :  { %v537_v4 = vpack.c.bf16 %v101_v2, %v97_v1  ;;  %v105_v6 = vld [vmem:[#allocation7 + $0x48] sm:$0xff]  ;;  %v539_v8 = vpack.c.bf16 %v100_v5, %v96_v3  ;;  %v104_v10 = vld [vmem:[#allocation7 + $0x40] sm:$0xff]  ;;  %v103_v13 = vld [vmem:[#allocation7 + $0x38] sm:$0xff] }
  0x4d   :  { %v109_v7 = vld [vmem:[#allocation7 + $0x68] sm:$0xff]  ;;  %v108_v11 = vld [vmem:[#allocation7 + $0x60] sm:$0xff]  ;;  %v569_v17 = vpack.c.bf16 %v103_v13, %v99_v12  ;;  %v98_v18 = vld [vmem:[#allocation7 + $0x10] sm:$0xff] }
  0x4e   :  { %v541_v9 = vpack.c.bf16 %v109_v7, %v105_v6  ;;  %538 = vmatprep.subr.bf16.mxu0 %v537_v4  ;;  %v113_v14 = vld [vmem:[#allocation7 + $0x88] sm:$0xff]  ;;  %v543_v16 = vpack.c.bf16 %v108_v11, %v104_v10  ;;  %v102_v19 = vld [vmem:[#allocation7 + $0x30] sm:$0xff]  ;;  %v112_v20 = vld [vmem:[#allocation7 + $0x80] sm:$0xff] }
  0x4f   :  { %v117_v15 = vld [vmem:[#allocation7 + $0xa8] sm:$0xff]  ;;  %540 = vmatpush1.bf16.msra.mxu0 %v539_v8  ;;  %v571_v22 = vpack.c.bf16 %v102_v19, %v98_v18  ;;  %v116_v23 = vld [vmem:[#allocation7 + $0xa0] sm:$0xff]  ;;  %v107_v24 = vld [vmem:[#allocation7 + $0x58] sm:$0xff]  ;;  %570 = vmatprep.subr.bf16.mxu1 %v569_v17 }
  0x50   :  { %542 = vmatprep.subr.bf16.mxu0 %v541_v9  ;;  %v545_v21 = vpack.c.bf16 %v117_v15, %v113_v14  ;;  %v111_v25 = vld [vmem:[#allocation7 + $0x78] sm:$0xff]  ;;  %v121_v27 = vld [vmem:[#allocation7 + $0xc8] sm:$0xff]  ;;  %v106_v29 = vld [vmem:[#allocation7 + $0x50] sm:$0xff]  ;;  %v547_v31 = vpack.c.bf16 %v116_v23, %v112_v20 }
  0x51   :  { %v573_v26 = vpack.c.bf16 %v111_v25, %v107_v24  ;;  %v125_v28 = vld [vmem:[#allocation7 + $0xe8] sm:$0xff]  ;;  %572 = vmatpush1.bf16.msra.mxu1 %v571_v22  ;;  %v110_v30 = vld [vmem:[#allocation7 + $0x70] sm:$0xff]  ;;  %v120_v33 = vld [vmem:[#allocation7 + $0xc0] sm:$0xff] }
  0x52   :  { %v575_v32 = vpack.c.bf16 %v110_v30, %v106_v29  ;;  %v115_v34 = vld [vmem:[#allocation7 + $0x98] sm:$0xff]  ;;  %v549_v36 = vpack.c.bf16 %v125_v28, %v121_v27  ;;  %v124_v37 = vld [vmem:[#allocation7 + $0xe0] sm:$0xff]  ;;  %v114_v39 = vld [vmem:[#allocation7 + $0x90] sm:$0xff] }
  0x53   :  { %544 = vmatpush1.bf16.msra.mxu0 %v543_v16  ;;  %574 = vmatprep.subr.bf16.mxu1 %v573_v26  ;;  %v119_v35 = vld [vmem:[#allocation7 + $0xb8] sm:$0xff]  ;;  %v118_v40 = vld [vmem:[#allocation7 + $0xb0] sm:$0xff]  ;;  %v129_v41 = vld [vmem:[#allocation7 + $0x108] sm:$0xff]  ;;  %v551_v46 = vpack.c.bf16 %v124_v37, %v120_v33 }
  0x54   :  { %546 = vmatprep.subr.bf16.mxu0 %v545_v21  ;;  %v577_v38 = vpack.c.bf16 %v119_v35, %v115_v34  ;;  %v133_v42 = vld [vmem:[#allocation7 + $0x128] sm:$0xff]  ;;  %v123_v43 = vld [vmem:[#allocation7 + $0xd8] sm:$0xff]  ;;  %v579_v44 = vpack.c.bf16 %v118_v40, %v114_v39  ;;  %v128_v47 = vld [vmem:[#allocation7 + $0x100] sm:$0xff] }
  0x55   :  { %576 = vmatpush1.bf16.msra.mxu1 %v575_v32  ;;  %v127_v45 = vld [vmem:[#allocation7 + $0xf8] sm:$0xff]  ;;  %v122_v49 = vld [vmem:[#allocation7 + $0xd0] sm:$0xff]  ;;  %v553_v51 = vpack.c.bf16 %v133_v42, %v129_v41  ;;  %v132_v52 = vld [vmem:[#allocation7 + $0x120] sm:$0xff] }
  0x56   :  { %578 = vmatprep.subr.bf16.mxu1 %v577_v38  ;;  %v581_v48 = vpack.c.bf16 %v127_v45, %v123_v43  ;;  %v126_v50 = vld [vmem:[#allocation7 + $0xf0] sm:$0xff]  ;;  %v131_v53 = vld [vmem:[#allocation7 + $0x118] sm:$0xff]  ;;  %v137_v55 = vld [vmem:[#allocation7 + $0x148] sm:$0xff]  ;;  %v555_v58 = vpack.c.bf16 %v132_v52, %v128_v47 }
  0x57   :  { %548 = vmatpush1.bf16.msra.mxu0 %v547_v31  ;;  %v135_v54 = vld [vmem:[#allocation7 + $0x138] sm:$0xff]  ;;  %v141_v56 = vld [vmem:[#allocation7 + $0x168] sm:$0xff]  ;;  %v583_v57 = vpack.c.bf16 %v126_v50, %v122_v49  ;;  %v136_v59 = vld [vmem:[#allocation7 + $0x140] sm:$0xff] }
  0x58   :  { %550 = vmatprep.subr.bf16.mxu0 %v549_v36  ;;  %v585_v60 = vpack.c.bf16 %v135_v54, %v131_v53  ;;  %v130_v61 = vld [vmem:[#allocation7 + $0x110] sm:$0xff]  ;;  %v557_v63 = vpack.c.bf16 %v141_v56, %v137_v55  ;;  %v140_v1 = vld [vmem:[#allocation7 + $0x160] sm:$0xff]  ;;  %v139_v2 = vld [vmem:[#allocation7 + $0x158] sm:$0xff] }
  0x59   :  { %580 = vmatpush1.bf16.msra.mxu1 %v579_v44  ;;  %v134_v62 = vld [vmem:[#allocation7 + $0x130] sm:$0xff]  ;;  %v143_v3 = vld [vmem:[#allocation7 + $0x178] sm:$0xff]  ;;  %v145_v4 = vld [vmem:[#allocation7 + $0x188] sm:$0xff]  ;;  %v559_v7 = vpack.c.bf16 %v140_v1, %v136_v59 }
  0x5a   :  { %582 = vmatprep.subr.bf16.mxu1 %v581_v48  ;;  %v149_v5 = vld [vmem:[#allocation7 + $0x1a8] sm:$0xff]  ;;  %v587_v6 = vpack.c.bf16 %v134_v62, %v130_v61  ;;  %v144_v8 = vld [vmem:[#allocation7 + $0x180] sm:$0xff]  ;;  %v589_v9 = vpack.c.bf16 %v143_v3, %v139_v2  ;;  %v138_v10 = vld [vmem:[#allocation7 + $0x150] sm:$0xff] }
  0x5b   :  { %552 = vmatpush1.bf16.msra.mxu0 %v551_v46  ;;  %v142_v11 = vld [vmem:[#allocation7 + $0x170] sm:$0xff]  ;;  %v561_v12 = vpack.c.bf16 %v149_v5, %v145_v4  ;;  %v148_v13 = vld [vmem:[#allocation7 + $0x1a0] sm:$0xff]  ;;  %v147_v14 = vld [vmem:[#allocation7 + $0x198] sm:$0xff] }
  0x5c   :  { %554 = vmatprep.subr.bf16.mxu0 %v553_v51  ;;  %v151_v15 = vld [vmem:[#allocation7 + $0x1b8] sm:$0xff]  ;;  %v153_v16 = vld [vmem:[#allocation7 + $0x1c8] sm:$0xff]  ;;  %v591_v18 = vpack.c.bf16 %v142_v11, %v138_v10  ;;  %v563_v19 = vpack.c.bf16 %v148_v13, %v144_v8  ;;  %v152_v20 = vld [vmem:[#allocation7 + $0x1c0] sm:$0xff] }
  0x5d   :  { %584 = vmatpush1.bf16.msra.mxu1 %v583_v57  ;;  %v157_v17 = vld [vmem:[#allocation7 + $0x1e8] sm:$0xff]  ;;  %v593_v21 = vpack.c.bf16 %v151_v15, %v147_v14  ;;  %v146_v22 = vld [vmem:[#allocation7 + $0x190] sm:$0xff]  ;;  %v156_v25 = vld [vmem:[#allocation7 + $0x1e0] sm:$0xff] }
  0x5e   :  { %586 = vmatprep.subr.bf16.mxu1 %v585_v60  ;;  %v150_v23 = vld [vmem:[#allocation7 + $0x1b0] sm:$0xff]  ;;  %v565_v24 = vpack.c.bf16 %v157_v17, %v153_v16  ;;  %v155_v26 = vld [vmem:[#allocation7 + $0x1d8] sm:$0xff]  ;;  %v80_v28 = vld [vmem:[#allocation5 + $0x8] sm:$0xff]  ;;  %v567_v31 = vpack.c.bf16 %v156_v25, %v152_v20  ;;  %v450_v60 = vlaneseq }
  0x5f   :  { %556 = vmatpush1.bf16.msra.mxu0 %v555_v58  ;;  %v159_v27 = vld [vmem:[#allocation7 + $0x1f8] sm:$0xff]  ;;  %v84_v29 = vld [vmem:[#allocation5 + $0x28] sm:$0xff]  ;;  %v595_v30 = vpack.c.bf16 %v150_v23, %v146_v22  ;;  %v154_v33 = vld [vmem:[#allocation7 + $0x1d0] sm:$0xff] }
  0x60   :  { %558 = vmatprep.subr.bf16.mxu0 %v557_v63  ;;  %v597_v32 = vpack.c.bf16 %v159_v27, %v155_v26  ;;  %v158_v34 = vld [vmem:[#allocation7 + $0x1f0] sm:$0xff]  ;;  %v601_v35 = vpack.c.bf16 %v84_v29, %v80_v28  ;;  %v79_v36 = vld [vmem:[#allocation5] sm:$0xff]  ;;  %v88_v38 = vld [vmem:[#allocation5 + $0x48] sm:$0xff]  ;;  %v451_v61 = vshrl.u32 %v450_v60, 7 }
  0x61   :  { %588 = vmatpush1.bf16.msra.mxu1 %v587_v6  ;;  %v83_v37 = vld [vmem:[#allocation5 + $0x20] sm:$0xff]  ;;  %v92_v39 = vld [vmem:[#allocation5 + $0x68] sm:$0xff]  ;;  %v82_v40 = vld [vmem:[#allocation5 + $0x18] sm:$0xff]  ;;  %v599_v43 = vpack.c.bf16 %v158_v34, %v154_v33 }
  0x62   :  { %590 = vmatprep.subr.bf16.mxu1 %v589_v9  ;;  %v86_v41 = vld [vmem:[#allocation5 + $0x38] sm:$0xff]  ;;  %v603_v44 = vpack.c.bf16 %v83_v37, %v79_v36  ;;  %v87_v45 = vld [vmem:[#allocation5 + $0x40] sm:$0xff]  ;;  %v81_v46 = vld [vmem:[#allocation5 + $0x10] sm:$0xff]  ;;  %v605_v48 = vpack.c.bf16 %v92_v39, %v88_v38  ;;  %v452_v62 = vsub.s32 0, %v451_v61  ;;  %v456_v1 = vsub.s32 1, %v451_v61 }
  0x63   :  { %560 = vmatpush1.bf16.msra.mxu0 %v559_v7  ;;  %v95_v42 = vld [vmem:[%s926_s1] sm:$0xff]  ;;  %v85_v47 = vld [vmem:[#allocation5 + $0x30] sm:$0xff]  ;;  %v91_v49 = vld [vmem:[#allocation5 + $0x60] sm:$0xff]  ;;  %v609_v50 = vpack.c.bf16 %v86_v41, %v82_v40  ;;  %v460_v5 = vsub.s32 2, %v451_v61  ;;  %v464_v13 = vsub.s32 3, %v451_v61 }
  0x64   :  { %562 = vmatprep.subr.bf16.mxu0 %v561_v12  ;;  %v90_v51 = vld [vmem:[#allocation5 + $0x58] sm:$0xff]  ;;  %v611_v53 = vpack.c.bf16 %v85_v47, %v81_v46  ;;  %v607_v54 = vpack.c.bf16 %v91_v49, %v87_v45  ;;  %v89_v56 = vld [vmem:[#allocation5 + $0x50] sm:$0xff]  ;;  %v448_v63 = vld [vmem:[#allocation8] sm:$0xf] }
  0x65   :  { %592 = vmatpush1.bf16.msra.mxu1 %v591_v18  ;;  %v94_v52 = vld [vmem:[#allocation5 + $0x78] sm:$0xff]  ;;  %v93_v57 = vld [vmem:[#allocation5 + $0x70] sm:$0xff]  ;;  %v453_v2 = vrot.slane %v448_v63, %v452_v62  ;;  %v457_v3 = vrot.slane %v448_v63, %v456_v1  ;;  %v461_v11 = vrot.slane %v448_v63, %v460_v5  ;;  %v465_v15 = vrot.slane %v448_v63, %v464_v13 }
  0x66   :  { %594 = vmatprep.subr.bf16.mxu1 %v593_v21  ;;  %v613_v55 = vpack.c.bf16 %v94_v52, %v90_v51  ;;  %v615_v58 = vpack.c.bf16 %v93_v57, %v89_v56  ;;  %v78_v59 = vld [vmem:[%s925_s0] sm:$0xff]  ;;  %s795_s0 = smov [#allocation11]  }
  0x67   :  { %564 = vmatpush1.bf16.msra.mxu0 %v563_v19  ;;  %s517_s25 = sshll.u32 %s795_s0, 4  ;;  %s518_s25 = int_to_ptr.vmem [resolvable:$true] %s517_s25 }
  0x68   :  { %566 = vmatprep.subr.bf16.mxu0 %v565_v24  ;;  %v493_v24 = vld [vmem:[#allocation2] sm:$0xff]  ;;  %s734_s27 = scalar_lea.vmem %s518_s25, 128  ;;  %p739_p5 = scmp.lt.s32.totalorder %s518_s25, %s518_s25 }
  0x69   :  { %596 = vmatpush1.bf16.msra.mxu1 %v595_v30  ;;  %p735_p4 = scmp.ne.s32.totalorder %s518_s25, %s734_s27  ;;  %p740_p6 = scmp.lt.s32.totalorder %s734_s27, %s734_s27 }
  0x6a   :  { %598 = vmatprep.subr.bf16.mxu1 %v597_v32 }
  0x6b   :  { %568 = vmatpush1.bf16.msra.mxu0 %v567_v31  ;;  %p741_p7 = por %p740_p6, %p739_p5 }
  0x6c   :  { %602 = vmatprep.subr.bf16.mxu0 %v601_v35 }
  0x6d   :  { %600 = vmatpush1.bf16.msra.mxu1 %v599_v43  ;;  %p742_p8 = pnand %p741_p7, %p735_p4 }
  0x6e   :  { %225 = vmatmul.mubr.f32.vlgmr.msra.gmra.mrb[0].mxu0 %v95_v42  ;;  %610 = vmatprep.subr.bf16.mxu1 %v609_v50 }
  0x6f   :  { %604 = vmatpush1.bf16.msra.mxu0 %v603_v44  ;;  %370 = vmatprep.mubr.f32.mxu0 %v794_v0 }
  0x70   :  { %606 = vmatprep.subr.bf16.mxu0 %v605_v48  ;;  %296 = vmatmul.mubr.f32.vlgmr.msra.gmra.mrb[0].mxu1 %v95_v42 }
  0x71   :  { %612 = vmatpush1.bf16.msra.mxu1 %v611_v53  ;;  %441 = vmatprep.mubr.f32.mxu1 %v794_v0 }
  0x72   :  { %614 = vmatprep.subr.bf16.mxu1 %v613_v55 }
  0x73   :  { %608 = vmatpush1.bf16.msra.mxu0 %v607_v54 }
  0x75   :  { %616 = vmatpush1.bf16.msra.mxu1 %v615_v58 }
  0x76   :  { %532 = vmatmul.mubr.msk.f32.vlgmr.msra.gmra.mrb[0].mxu0 %vm302_vm0, %v78_v59 }
  0x78   :  { %533 = vmatmul.mubr.msk.f32.vlgmr.msra.gmra.mrb[0].mxu1 %vm302_vm0, %v78_v59 }
 0x149   :  { %v372_v4 = vpop.f32.mrb[0].mxu0 }
 0x14a   :  { %v470_v0 = vadd.f32 %v453_v2, %v372_v4  ;;  %v374_v6 = vpop.f32.mrb[1].mxu0 }
 0x14b   :  { %v471_v7 = vadd.f32 %v457_v3, %v374_v6  ;;  %v443_v9 = vpop.f32.mrb[0].mxu1 }
 0x14c   :  { %v534_v8 = vmul.f32 -1.442695, %v470_v0  ;;  %v445_v12 = vpop.f32.mrb[1].mxu1  ;;  %v472_v14 = vadd.f32 %v461_v11, %v443_v9 }
 0x14d   :  { %v535_v10 = vmul.f32 -1.442695, %v471_v7  ;;  %v473_v17 = vadd.f32 %v465_v15, %v445_v12 }
 0x14e   :  { %630 = vpow2.f32 %v534_v8  ;;  %v536_v16 = vmul.f32 -1.442695, %v472_v14 }
 0x14f   :  { %632 = vpow2.f32 %v535_v10 }
 0x150   :  { %634 = vpow2.f32 %v536_v16 }
 0x151   :  { %636 = vtanh.f32 %v473_v17 }
 0x158   :  { %v631_v18 = vpop.eup %630 }
 0x159   :  { %v633_v19 = vpop.eup %632  ;;  %v483_v20 = vadd.f32 1.0, %v631_v18 }
 0x15a   :  { %v484_v21 = vadd.f32 1.0, %v633_v19  ;;  %v635_v22 = vpop.eup %634 }
 0x15b   :  { %638 = vrcp.f32 %v483_v20  ;;  %v637_v23 = vpop.eup %636  ;;  %v485_v27 = vadd.f32 1.0, %v635_v22 }
 0x15c   :  { %640 = vrcp.f32 %v484_v21 }
 0x15d   :  { %642 = vrcp.f32 %v485_v27 }
 0x165   :  { %v639_v25 = vpop.eup %638 }
 0x166   :  { %v641_v26 = vpop.eup %640  ;;  %v495_v28 = vmul.f32 %v639_v25, %v637_v23 }
 0x167   :  { %v494_v29 = vmul.f32 %v641_v26, %v493_v24 }
 0x169   :  { %v496_v30 = vadd.f32 %v495_v28, %v494_v29 }
 0x16b   :  { %500 = vst [vmem:[#allocation11] sm:$0xff] %v496_v30  ;;  %644 = vtanh.f32 %v496_v30 }
 0x16c   :  { %745 = shalt.err (!%p742_p8)
}
 0x16d   :  { %s746_s30 = scalar_lea.hbm %s932_s7, 128 }
 0x16e   :  { %p747_p9 = scmp.ne.s32.totalorder %s932_s7, %s746_s30  ;;  %p750_p10 = scmp.lt.u32.totalorder %s746_s30, %s932_s7 }
 0x170   :  { %p752_p11 = pnand %p750_p10, %p747_p9 }
 0x172   :  { %755 = shalt.err (!%p752_p11)
}
 0x173   :  { %520 = dma.vmem_to_hbm [thread:$0]  %s518_s25, 128, %s932_s7, [#allocation12]   ;;  %v643_v31 = vpop.eup %642 }
 0x174   :  { %s796_s15 = smov [#allocation10]  }
 0x175   :  { %s507_s16 = sshll.u32 %s796_s15, 4  ;;  %v645_v32 = vpop.eup %644  ;;  %s508_s16 = int_to_ptr.vmem [resolvable:$true] %s507_s16 }
 0x176   :  { %v498_v33 = vmul.f32 %v645_v32, %v643_v31  ;;  %s756_s17 = scalar_lea.vmem %s508_s16, 128  ;;  %p761_p13 = scmp.lt.s32.totalorder %s508_s16, %s508_s16 }
 0x177   :  { %p757_p12 = scmp.ne.s32.totalorder %s508_s16, %s756_s17  ;;  %p762_p0 = scmp.lt.s32.totalorder %s756_s17, %s756_s17 }
 0x178   :  { %499 = vst [vmem:[#allocation10] sm:$0xff] %v498_v33 }
 0x179   :  { %p763_p1 = por %p762_p0, %p761_p13 }
 0x17b   :  { %p764_p2 = pnand %p763_p1, %p757_p12 }
 0x17d   :  { %767 = shalt.err (!%p764_p2)
}
 0x17e   :  { %s768_s21 = scalar_lea.hbm %s931_s6, 128 }
 0x17f   :  { %p769_p3 = scmp.ne.s32.totalorder %s931_s6, %s768_s21  ;;  %p772_p4 = scmp.lt.u32.totalorder %s768_s21, %s931_s6 }
 0x181   :  { %p774_p5 = pnand %p772_p4, %p769_p3 }
 0x183   :  { %777 = shalt.err (!%p774_p5)
}
 0x184   :  { %510 = dma.vmem_to_hbm [thread:$0]  %s508_s16, 128, %s931_s6, [#allocation4]  }
 0x185   :  { %784 = dma.done.wait [#allocation4], 128  }
 0x186   :  { %785 = vsyncadd [#allocation4], 4294967168 }
 0x187   :  { %786 = dma.done.wait [#allocation12], 128  }
 0x188   :  { %787 = vsyncadd [#allocation12], 4294967168 }
 0x189   :  { %527 = vsyncpa [#allocation3], 1 }
 0x18a   :  { %528 = vsyncpa [#allocation6], 1 }
 0x18b   :  { %529 = vsyncpa [#allocation9], 1 }
 0x18c   :  { %530 = vsyncpa [#allocation4], 1 }
 0x18d   :  { %531 = vsyncpa [#allocation12], 1 }

</bundles_post_ra>
